<compile_context>
chip_gen: v6e
topology: v6e:2x2x1
jax: 0.10.0
libtpu: 0.0.40
codegen_flags: <defaults>
</compile_context>

<pallas_src>
import functools

import jax
import jax.numpy as jnp
from jax.experimental import pallas as pl
from jax.experimental.pallas import tpu as pltpu

INPUT_SIZE = 42
HIDDEN_SIZE = 128
HIDDEN2_SIZE = HIDDEN_SIZE // 2   # 64
OUTPUT_SIZE = 7
OUT_PAD = 8                       # pad classes 7 -> 8 only (sublane-friendly, tiny DMA)
NEG_BIG = -1e30                   # padded-lane bias -> exp underflows to exactly 0

# Default max batch tile.  4096 rows: per-step VMEM is ~16-20 MiB (x/out double
# buffers + compiler slabs for h1/h2/logits), well under the 32 MiB limit below and
# under v7x's 64 MiB/TC; big enough to amortize the ~0.35 us per-step overhead on
# v5e/v6e's slower HBM.
DEFAULT_TB = 4096


def _round_up(n, m):
    return ((n + m - 1) // m) * m


def _choose_tiling(batch, tb):
    """Balanced batch tiling with a minimum grid-step count.

    Guarantees:
      * TB is a multiple of 8 and <= tb,
      * >= 2 grid steps when batch >= 16 (pipelining / v7x megacore),
        >= 4 when batch >= 32,
      * padding waste is < 8 rows per step (no doubling of work for B = tb*k + 1).
    """
    b8 = _round_up(batch, 8)
    if b8 >= 4 * 8:
        min_steps = 4
    elif b8 >= 2 * 8:
        min_steps = 2
    else:
        min_steps = 1
    nsteps = max(pl.cdiv(b8, tb), min_steps)
    tb_actual = _round_up(pl.cdiv(b8, nsteps), 8)
    nsteps = pl.cdiv(b8, tb_actual)
    bp = nsteps * tb_actual
    return tb_actual, bp, nsteps


def simplenet_kernel(x_ref, w1_ref, b1_ref, w2_ref, b2_ref, w3_ref, b3_ref, o_ref):
    x = x_ref[...]

    # fc1 + ReLU
    h1 = jnp.dot(x, w1_ref[...], preferred_element_type=jnp.float32) + b1_ref[...]
    h1 = jnp.maximum(h1, 0.0)

    # fc2 + ReLU
    h2 = jnp.dot(h1, w2_ref[...], preferred_element_type=jnp.float32) + b2_ref[...]
    h2 = jnp.maximum(h2, 0.0)

    # fc3 (padded 7 -> 8 output columns; padded lane gets bias -1e30)
    logits = jnp.dot(h2, w3_ref[...], preferred_element_type=jnp.float32) + b3_ref[...]

    # Numerically stable softmax over 8 lanes.  The padded lane contributes
    # exp(-1e30 - m) == 0; the denominator always contains exp(0) = 1 from the
    # row max, so no NaN / division by zero.  Narrow (TB,1) reciprocal + multiply
    # instead of a full-width divide (exact reciprocal: preserves 1e-5 parity).
    m = jnp.max(logits, axis=-1, keepdims=True)
    e = jnp.exp(logits - m)
    inv = 1.0 / jnp.sum(e, axis=-1, keepdims=True)
    o_ref[...] = (e * inv).astype(o_ref.dtype)


@functools.partial(jax.jit, static_argnames=("tb",))
def simplenet_forward(x, params, *, tb=DEFAULT_TB):
    w1, b1, w2, b2, w3, b3 = params
    B = x.shape[0]

    # NOTE: casting x / w1 / w2 to bf16 for the two large matmuls would roughly
    # halve the dominant HBM read traffic and use the bf16-native MXU on
    # v5e/v6e/v7x; kept in f32 here to preserve 1e-5 parity with the reference.

    # Pad fc3 to 8 output columns (zero weights, -1e30 bias on the padded lane).
    w3p = jnp.pad(w3, ((0, 0), (0, OUT_PAD - OUTPUT_SIZE)))
    b3p = jnp.pad(b3, ((0, 0), (0, OUT_PAD - OUTPUT_SIZE)), constant_values=NEG_BIG)

    # Balanced batch tiling (>= 2-4 grid steps, < 8 rows padding waste per step).
    TB, Bp, nsteps = _choose_tiling(B, tb)
    if Bp != B:
        x = jnp.pad(x, ((0, Bp - B), (0, 0)))
    grid = (nsteps,)

    # x / out move per grid step; weights use constant index_maps -> DMA'd once,
    # resident in VMEM for the whole grid.
    x_spec = pl.BlockSpec((TB, INPUT_SIZE), lambda i: (i, 0))
    out_spec = pl.BlockSpec((TB, OUT_PAD), lambda i: (i, 0))
    resident = lambda shape: pl.BlockSpec(shape, lambda i: (0, 0))

    weight_bytes = sum(4 * a.size for a in (w1, b1, w2, b2, w3p, b3p))
    cost = pl.CostEstimate(
        flops=2 * Bp * (INPUT_SIZE * HIDDEN_SIZE
                        + HIDDEN_SIZE * HIDDEN2_SIZE
                        + HIDDEN2_SIZE * OUT_PAD),
        transcendentals=Bp * OUT_PAD,
        bytes_accessed=Bp * (INPUT_SIZE + OUT_PAD) * 4 + weight_bytes,
    )

    out = pl.pallas_call(
        simplenet_kernel,
        out_shape=jax.ShapeDtypeStruct((Bp, OUT_PAD), jnp.float32),
        grid=grid,
        in_specs=[
            x_spec,
            resident(w1.shape), resident(b1.shape),
            resident(w2.shape), resident(b2.shape),
            resident(w3p.shape), resident(b3p.shape),
        ],
        out_specs=out_spec,
        compiler_params=pltpu.CompilerParams(
            dimension_semantics=("parallel",),
            vmem_limit_bytes=32 * 1024 * 1024,
        ),
        cost_estimate=cost,
    )(x, w1, b1, w2, b2, w3p, b3p)

    # With an 8-wide padded output this slice touches ~32 B/row -> negligible.
    return out[:B, :OUTPUT_SIZE]


def init_params(key):
    """Deterministic init mirroring nn.Linear's U(-1/sqrt(fan_in), 1/sqrt(fan_in))."""
    def linear_init(key, fan_in, fan_out):
        kw, kb = jax.random.split(key)
        bound = 1.0 / jnp.sqrt(float(fan_in))
        # stored as [in, out] so the kernel computes x @ W
        w = jax.random.uniform(kw, (fan_in, fan_out), jnp.float32, -bound, bound)
        b = jax.random.uniform(kb, (1, fan_out), jnp.float32, -bound, bound)
        return w, b

    k1, k2, k3 = jax.random.split(key, 3)
    w1, b1 = linear_init(k1, INPUT_SIZE, HIDDEN_SIZE)
    w2, b2 = linear_init(k2, HIDDEN_SIZE, HIDDEN2_SIZE)
    w3, b3 = linear_init(k3, HIDDEN2_SIZE, OUTPUT_SIZE)
    return (w1, b1, w2, b2, w3, b3)


def reference_forward(x, params):
    w1, b1, w2, b2, w3, b3 = params
    h1 = jax.nn.relu(x @ w1 + b1)
    h2 = jax.nn.relu(h1 @ w2 + b2)
    logits = h2 @ w3 + b3
    return jax.nn.softmax(logits, axis=1)


if __name__ == "__main__":
    key = jax.random.PRNGKey(0)
    k_params, k_x = jax.random.split(key)

    params = init_params(k_params)
    batch = 8
    x = jax.random.normal(k_x, (batch, INPUT_SIZE), jnp.float32)

    out = simplenet_forward(x, params)
    out = jax.block_until_ready(out)

    ref = reference_forward(x, params)
    assert out.shape == (batch, OUTPUT_SIZE)
    assert jnp.allclose(out, ref, atol=1e-5, rtol=1e-5), "mismatch vs JAX reference"
    assert jnp.allclose(jnp.sum(out, axis=1), 1.0, atol=1e-5), "softmax rows must sum to 1"

    # Batch that is not a multiple of the tile / sublane size (exercises padding
    # and the multi-step grid path).
    x2 = jax.random.normal(jax.random.PRNGKey(1), (13, INPUT_SIZE), jnp.float32)
    out2 = jax.block_until_ready(simplenet_forward(x2, params))
    assert jnp.allclose(out2, reference_forward(x2, params), atol=1e-5, rtol=1e-5)

    # Larger batch: exercises balanced tiling with >= 4 grid steps.
    x3 = jax.random.normal(jax.random.PRNGKey(2), (1000, INPUT_SIZE), jnp.float32)
    out3 = jax.block_until_ready(simplenet_forward(x3, params))
    assert jnp.allclose(out3, reference_forward(x3, params), atol=1e-5, rtol=1e-5)

    print("KERNEL_OK")
</pallas_src>

<mosaic_0001>
module attributes {stable_mosaic.version = 11 : i64} {
  func.func @simplenet_kernel(%arg0: i32, %arg1: memref<8x42xf32, #tpu.memory_space<vmem>>, %arg2: memref<42x128xf32, #tpu.memory_space<vmem>>, %arg3: memref<1x128xf32, #tpu.memory_space<vmem>>, %arg4: memref<128x64xf32, #tpu.memory_space<vmem>>, %arg5: memref<1x64xf32, #tpu.memory_space<vmem>>, %arg6: memref<64x8xf32, #tpu.memory_space<vmem>>, %arg7: memref<1x8xf32, #tpu.memory_space<vmem>>, %arg8: memref<8x8xf32, #tpu.memory_space<vmem>>) attributes {dimension_semantics = [#tpu.dimension_semantics<parallel>], iteration_bounds = array<i64: 1>, scalar_prefetch = 0 : i64, scratch_operands = 0 : i64, tpu.core_type = #tpu.core_type<tc>, window_params = [{transform_indices = @transform_0, window_bounds = array<i64: 8, 42>}, {pipeline_mode = #tpu.pipeline_mode<synchronous>, transform_indices = @transform_1, window_bounds = array<i64: 42, 128>}, {pipeline_mode = #tpu.pipeline_mode<synchronous>, transform_indices = @transform_2, window_bounds = array<i64: 1, 128>}, {pipeline_mode = #tpu.pipeline_mode<synchronous>, transform_indices = @transform_3, window_bounds = array<i64: 128, 64>}, {pipeline_mode = #tpu.pipeline_mode<synchronous>, transform_indices = @transform_4, window_bounds = array<i64: 1, 64>}, {pipeline_mode = #tpu.pipeline_mode<synchronous>, transform_indices = @transform_5, window_bounds = array<i64: 64, 8>}, {pipeline_mode = #tpu.pipeline_mode<synchronous>, transform_indices = @transform_6, window_bounds = array<i64: 1, 8>}, {transform_indices = @transform_7, window_bounds = array<i64: 8, 8>}]} {
    %c0 = arith.constant 0 : index
    %c0_0 = arith.constant 0 : index
    %0 = vector.load %arg1[%c0, %c0_0] : memref<8x42xf32, #tpu.memory_space<vmem>>, vector<8x42xf32>
    %c0_1 = arith.constant 0 : index
    %c0_2 = arith.constant 0 : index
    %1 = vector.load %arg2[%c0_1, %c0_2] : memref<42x128xf32, #tpu.memory_space<vmem>>, vector<42x128xf32>
    %cst = arith.constant dense<0.000000e+00> : vector<8x128xf32>
    %2 = tpu.matmul %0, %1, %cst {dimension_numbers = #tpu.dot_dimension_numbers<[1], [0], [0], [1], [0, 0, 1, 1], [], []>} : vector<8x42xf32>, vector<42x128xf32>, vector<8x128xf32> -> vector<8x128xf32>
    %c0_3 = arith.constant 0 : index
    %c0_4 = arith.constant 0 : index
    %3 = vector.load %arg3[%c0_3, %c0_4] : memref<1x128xf32, #tpu.memory_space<vmem>>, vector<1x128xf32>
    %4 = vector.broadcast %3 : vector<1x128xf32> to vector<8x128xf32>
    %5 = arith.addf %2, %4 : vector<8x128xf32>
    %cst_5 = arith.constant 0.000000e+00 : f32
    %6 = vector.broadcast %cst_5 : f32 to vector<8x128xf32>
    %7 = arith.maximumf %5, %6 : vector<8x128xf32>
    %c0_6 = arith.constant 0 : index
    %c0_7 = arith.constant 0 : index
    %8 = vector.load %arg4[%c0_6, %c0_7] : memref<128x64xf32, #tpu.memory_space<vmem>>, vector<128x64xf32>
    %cst_8 = arith.constant dense<0.000000e+00> : vector<8x64xf32>
    %9 = tpu.matmul %7, %8, %cst_8 {dimension_numbers = #tpu.dot_dimension_numbers<[1], [0], [0], [1], [0, 0, 1, 1], [], []>} : vector<8x128xf32>, vector<128x64xf32>, vector<8x64xf32> -> vector<8x64xf32>
    %c0_9 = arith.constant 0 : index
    %c0_10 = arith.constant 0 : index
    %10 = vector.load %arg5[%c0_9, %c0_10] : memref<1x64xf32, #tpu.memory_space<vmem>>, vector<1x64xf32>
    %11 = vector.broadcast %10 : vector<1x64xf32> to vector<8x64xf32>
    %12 = arith.addf %9, %11 : vector<8x64xf32>
    %cst_11 = arith.constant 0.000000e+00 : f32
    %13 = vector.broadcast %cst_11 : f32 to vector<8x64xf32>
    %14 = arith.maximumf %12, %13 : vector<8x64xf32>
    %c0_12 = arith.constant 0 : index
    %c0_13 = arith.constant 0 : index
    %15 = vector.load %arg6[%c0_12, %c0_13] : memref<64x8xf32, #tpu.memory_space<vmem>>, vector<64x8xf32>
    %cst_14 = arith.constant dense<0.000000e+00> : vector<8x8xf32>
    %16 = tpu.matmul %14, %15, %cst_14 {dimension_numbers = #tpu.dot_dimension_numbers<[1], [0], [0], [1], [0, 0, 1, 1], [], []>} : vector<8x64xf32>, vector<64x8xf32>, vector<8x8xf32> -> vector<8x8xf32>
    %c0_15 = arith.constant 0 : index
    %c0_16 = arith.constant 0 : index
    %17 = vector.load %arg7[%c0_15, %c0_16] : memref<1x8xf32, #tpu.memory_space<vmem>>, vector<1x8xf32>
    %18 = vector.broadcast %17 : vector<1x8xf32> to vector<8x8xf32>
    %19 = arith.addf %16, %18 : vector<8x8xf32>
    %cst_17 = arith.constant dense<0xFF800000> : vector<8xf32>
    %20 = vector.multi_reduction <maximumf>, %19, %cst_17 [1] : vector<8x8xf32> to vector<8xf32>
    %21 = vector.shape_cast %20 : vector<8xf32> to vector<8x1xf32>
    %22 = vector.broadcast %21 : vector<8x1xf32> to vector<8x8xf32>
    %23 = arith.subf %19, %22 : vector<8x8xf32>
    %24 = math.exp %23 : vector<8x8xf32>
    %cst_18 = arith.constant dense<0.000000e+00> : vector<8xf32>
    %25 = vector.multi_reduction <add>, %24, %cst_18 [1] : vector<8x8xf32> to vector<8xf32>
    %26 = vector.shape_cast %25 : vector<8xf32> to vector<8x1xf32>
    %cst_19 = arith.constant 1.000000e+00 : f32
    %27 = vector.broadcast %cst_19 : f32 to vector<8x1xf32>
    %28 = arith.divf %27, %26 : vector<8x1xf32>
    %29 = vector.broadcast %28 : vector<8x1xf32> to vector<8x8xf32>
    %30 = arith.mulf %24, %29 : vector<8x8xf32>
    %c0_20 = arith.constant 0 : index
    %c0_21 = arith.constant 0 : index
    %31 = vector.load %arg8[%c0_20, %c0_21] : memref<8x8xf32, #tpu.memory_space<vmem>>, vector<8x8xf32>
    tpu.vector_store %arg8[%c0_20, %c0_21], %30 {strides = array<i32>} : memref<8x8xf32, #tpu.memory_space<vmem>>, vector<8x8xf32>,
    return
  }
  func.func @transform_0(%arg0: i32) -> (i32, i32) {
    %c0_i32 = arith.constant 0 : i32
    %c0_i32_0 = arith.constant 0 : i32
    return %arg0, %c0_i32 : i32, i32
  }
  func.func @transform_1(%arg0: i32) -> (i32, i32) {
    %c0_i32 = arith.constant 0 : i32
    %c0_i32_0 = arith.constant 0 : i32
    %c0_i32_1 = arith.constant 0 : i32
    return %c0_i32, %c0_i32_0 : i32, i32
  }
  func.func @transform_2(%arg0: i32) -> (i32, i32) {
    %c0_i32 = arith.constant 0 : i32
    %c0_i32_0 = arith.constant 0 : i32
    %c0_i32_1 = arith.constant 0 : i32
    return %c0_i32, %c0_i32_0 : i32, i32
  }
  func.func @transform_3(%arg0: i32) -> (i32, i32) {
    %c0_i32 = arith.constant 0 : i32
    %c0_i32_0 = arith.constant 0 : i32
    %c0_i32_1 = arith.constant 0 : i32
    return %c0_i32, %c0_i32_0 : i32, i32
  }
  func.func @transform_4(%arg0: i32) -> (i32, i32) {
    %c0_i32 = arith.constant 0 : i32
    %c0_i32_0 = arith.constant 0 : i32
    %c0_i32_1 = arith.constant 0 : i32
    return %c0_i32, %c0_i32_0 : i32, i32
  }
  func.func @transform_5(%arg0: i32) -> (i32, i32) {
    %c0_i32 = arith.constant 0 : i32
    %c0_i32_0 = arith.constant 0 : i32
    %c0_i32_1 = arith.constant 0 : i32
    return %c0_i32, %c0_i32_0 : i32, i32
  }
  func.func @transform_6(%arg0: i32) -> (i32, i32) {
    %c0_i32 = arith.constant 0 : i32
    %c0_i32_0 = arith.constant 0 : i32
    %c0_i32_1 = arith.constant 0 : i32
    return %c0_i32, %c0_i32_0 : i32, i32
  }
  func.func @transform_7(%arg0: i32) -> (i32, i32) {
    %c0_i32 = arith.constant 0 : i32
    %c0_i32_0 = arith.constant 0 : i32
    return %arg0, %c0_i32 : i32, i32
  }
}

</mosaic_0001>

<bundles_post_ra>
// kernel: simplenet_forward.1
= control target key start
LH: loop header
LB: loop body
LE: loop exit
PB: predicated region body
PF: predicated region fallthrough
CT: control target
= control target key end

     0   :  { %vm45_vm0 = vcmask 1041408   ;;  %v468_v1 = vmov 0.0   ;;  %vm469_vm1 = vmmov 0   ;;  %s655_s0 = inlined_call_operand.vmem [shape: f32[8,42], index: 0, kind: input, shape index: {}]   ;;  %s656_s1 = inlined_call_operand.vmem [shape: f32[42,128], index: 1, kind: input, shape index: {}]   ;;  %s657_s2 = inlined_call_operand.vmem [shape: f32[1,128], index: 2, kind: input, shape index: {}]   ;;  %s658_s3 = inlined_call_operand.vmem [shape: f32[128,64], index: 3, kind: input, shape index: {}]   ;;  %s659_s4 = inlined_call_operand.vmem [shape: f32[1,64], index: 4, kind: input, shape index: {}]   ;;  %s660_s5 = inlined_call_operand.vmem [shape: f32[64,8], index: 5, kind: input, shape index: {}]   ;;  %s661_s6 = inlined_call_operand.vmem [shape: f32[1,8], index: 6, kind: input, shape index: {}]   ;;  %s662_s7 = inlined_call_operand.hbm [shape: f32[8,8], index: 7, kind: output, shape index: {}]  }
   0x1   :  { %v33_v0 = vld [vmem:[%s656_s1 + $0x28] sm:$0x3]  ;;  %370 = vmatprep.subr.mxu0 %v468_v1  ;;  %v32_v2 = vld [vmem:[%s656_s1 + $0x20] sm:$0xff]  ;;  %385 = vmatprep.subr.mxu1 %v468_v1  ;;  %v135_v3 = vld [vmem:[%s658_s3 + $0x78] sm:$0xff] }
   0x2   :  { %371 = vmatpush3.msk.msra.mxu0 %vm45_vm0, %v33_v0  ;;  %382 = vmatprep.mubr.msk.f32.mxu0 %vm469_vm1, %v468_v1  ;;  %v134_v4 = vld [vmem:[%s658_s3 + $0x70] sm:$0xff]  ;;  %v31_v5 = vld [vmem:[%s656_s1 + $0x18] sm:$0xff]  ;;  %v133_v6 = vld [vmem:[%s658_s3 + $0x68] sm:$0xff] }
   0x3   :  { %372 = vmatprep.subr.mxu0 %v468_v1  ;;  %386 = vmatpush3.msra.mxu1 %v135_v3  ;;  %v30_v7 = vld [vmem:[%s656_s1 + $0x10] sm:$0xff]  ;;  %v132_v8 = vld [vmem:[%s658_s3 + $0x60] sm:$0xff]  ;;  %v29_v9 = vld [vmem:[%s656_s1 + $0x8] sm:$0xff] }
   0x4   :  { %373 = vmatpush3.msra.mxu0 %v32_v2  ;;  %387 = vmatprep.subr.mxu1 %v468_v1 }
   0x5   :  { %374 = vmatprep.subr.mxu0 %v468_v1  ;;  %388 = vmatpush3.msra.mxu1 %v134_v4 }
   0x6   :  { %375 = vmatpush3.msra.mxu0 %v31_v5  ;;  %389 = vmatprep.subr.mxu1 %v468_v1 }
   0x7   :  { %376 = vmatprep.subr.mxu0 %v468_v1  ;;  %390 = vmatpush3.msra.mxu1 %v133_v6 }
   0x8   :  { %12 = vsyncpa [#allocation3], 0  ;;  %377 = vmatpush3.msra.mxu0 %v30_v7  ;;  %391 = vmatprep.subr.mxu1 %v468_v1  ;;  %v131_v10 = vld [vmem:[%s658_s3 + $0x58] sm:$0xff]  ;;  %v28_v11 = vld [vmem:[%s656_s1] sm:$0xff]  ;;  %vm41_vm2 = vcmask 343040   ;;  %vm229_vm3 = vcmask 523264  }
   0x9   :  { %378 = vmatprep.subr.mxu0 %v468_v1  ;;  %392 = vmatpush3.msra.mxu1 %v132_v8  ;;  %v27_v12 = vld [vmem:[%s655_s0] sm:$0xff]  ;;  %v130_v13 = vld [vmem:[%s658_s3 + $0x50] sm:$0xff]  ;;  %v129_v14 = vld [vmem:[%s658_s3 + $0x48] sm:$0xff]  ;;  %vm303_vm4 = vcmask 64512  }
   0xa   :  { %379 = vmatpush3.msra.mxu0 %v29_v9  ;;  %393 = vmatprep.subr.mxu1 %v468_v1  ;;  %v128_v15 = vld [vmem:[%s658_s3 + $0x40] sm:$0xff]  ;;  %v127_v16 = vld [vmem:[%s658_s3 + $0x38] sm:$0xff]  ;;  %v126_v17 = vld [vmem:[%s658_s3 + $0x30] sm:$0xff] }
   0xb   :  { %380 = vmatprep.subr.mxu0 %v468_v1  ;;  %394 = vmatpush3.msra.mxu1 %v131_v10  ;;  %v125_v18 = vld [vmem:[%s658_s3 + $0x28] sm:$0xff]  ;;  %v124_v19 = vld [vmem:[%s658_s3 + $0x20] sm:$0xff]  ;;  %v123_v20 = vld [vmem:[%s658_s3 + $0x18] sm:$0xff] }
   0xc   :  { %381 = vmatpush3.msra.mxu0 %v28_v11  ;;  %395 = vmatprep.subr.mxu1 %v468_v1  ;;  %v122_v21 = vld [vmem:[%s658_s3 + $0x10] sm:$0xff]  ;;  %v121_v22 = vld [vmem:[%s658_s3 + $0x8] sm:$0xff]  ;;  %v120_v23 = vld [vmem:[%s658_s3] sm:$0xff] }
   0xd   :  { %383 = vmatmul.mubr.msk.f32.vlgmr.msra.gmra.mxu0 %vm41_vm2, %v27_v12  ;;  %396 = vmatpush3.msra.mxu1 %v130_v13  ;;  %v221_v24 = vld [vmem:[%s660_s5 + $0x38] sm:$0xff]  ;;  %v220_v25 = vld [vmem:[%s660_s5 + $0x30] sm:$0xff]  ;;  %v219_v26 = vld [vmem:[%s660_s5 + $0x28] sm:$0xff] }
   0xe   :  { %397 = vmatprep.subr.mxu1 %v468_v1  ;;  %417 = vmatprep.mubr.msk.f32.mxu1 %vm469_vm1, %v468_v1  ;;  %v218_v27 = vld [vmem:[%s660_s5 + $0x20] sm:$0xff]  ;;  %v217_v28 = vld [vmem:[%s660_s5 + $0x18] sm:$0xff]  ;;  %v216_v34 = vld [vmem:[%s660_s5 + $0x10] sm:$0xff] }
   0xf   :  { %398 = vmatpush3.msra.mxu1 %v129_v14  ;;  %420 = vmatprep.subr.mxu0 %v468_v1  ;;  %v331_v29 = vld [vmem:[%s657_s2] ss:$0 sm:$0xff]  ;;  %v215_v35 = vld [vmem:[%s660_s5 + $0x8] sm:$0xff] }
  0x10   :  { %399 = vmatprep.subr.mxu1 %v468_v1  ;;  %436 = vmatprep.mubr.msk.f32.mxu0 %vm469_vm1, %v468_v1  ;;  %v214_v36 = vld [vmem:[%s660_s5] sm:$0xff] }
  0x11   :  { %400 = vmatpush3.msra.mxu1 %v128_v15  ;;  %421 = vmatpush3.msra.mxu0 %v221_v24  ;;  %v334_v37 = vld [vmem:[%s659_s4] ss:$0 sm:$0xff]  ;;  %s470_s4 = smov [#allocation2]  }
  0x12   :  { %401 = vmatprep.subr.mxu1 %v468_v1  ;;  %422 = vmatprep.subr.mxu0 %v468_v1  ;;  %v335_v42 = vld [vmem:[%s661_s6] ss:$0 sm:$0xff]  ;;  %s323_s5 = sshll.u32 %s470_s4, 4  ;;  %s324_s5 = int_to_ptr.vmem [resolvable:$true] %s323_s5 }
  0x13   :  { %402 = vmatpush3.msra.mxu1 %v127_v16  ;;  %423 = vmatpush3.msra.mxu0 %v220_v25  ;;  %s446_s6 = scalar_lea.vmem %s324_s5, 128  ;;  %p451_p1 = scmp.lt.s32.totalorder %s324_s5, %s324_s5 }
  0x14   :  { %403 = vmatprep.subr.mxu1 %v468_v1  ;;  %424 = vmatprep.subr.mxu0 %v468_v1  ;;  %p447_p0 = scmp.ne.s32.totalorder %s324_s5, %s446_s6  ;;  %p452_p2 = scmp.lt.s32.totalorder %s446_s6, %s446_s6 }
  0x15   :  { %404 = vmatpush3.msra.mxu1 %v126_v17  ;;  %425 = vmatpush3.msra.mxu0 %v219_v26 }
  0x16   :  { %405 = vmatprep.subr.mxu1 %v468_v1  ;;  %426 = vmatprep.subr.mxu0 %v468_v1  ;;  %p453_p3 = por %p452_p2, %p451_p1 }
  0x17   :  { %406 = vmatpush3.msra.mxu1 %v125_v18  ;;  %427 = vmatpush3.msra.mxu0 %v218_v27 }
  0x18   :  { %407 = vmatprep.subr.mxu1 %v468_v1  ;;  %428 = vmatprep.subr.mxu0 %v468_v1  ;;  %p454_p4 = pnand %p453_p3, %p447_p0 }
  0x19   :  { %408 = vmatpush3.msra.mxu1 %v124_v19  ;;  %429 = vmatpush3.msra.mxu0 %v217_v28 }
  0x1a   :  { %409 = vmatprep.subr.mxu1 %v468_v1  ;;  %430 = vmatprep.subr.mxu0 %v468_v1 }
  0x1b   :  { %410 = vmatpush3.msra.mxu1 %v123_v20  ;;  %431 = vmatpush3.msra.mxu0 %v216_v34 }
  0x1c   :  { %411 = vmatprep.subr.mxu1 %v468_v1  ;;  %432 = vmatprep.subr.mxu0 %v468_v1 }
  0x1d   :  { %412 = vmatpush3.msra.mxu1 %v122_v21  ;;  %433 = vmatpush3.msra.mxu0 %v215_v35 }
  0x1e   :  { %413 = vmatprep.subr.mxu1 %v468_v1  ;;  %434 = vmatprep.subr.mxu0 %v468_v1 }
  0x1f   :  { %414 = vmatpush3.msra.mxu1 %v121_v22  ;;  %435 = vmatpush3.msra.mxu0 %v214_v36 }
  0x20   :  { %415 = vmatprep.subr.mxu1 %v468_v1 }
  0x21   :  { %416 = vmatpush3.msra.mxu1 %v120_v23 }
  0xcd   :  { %v115_v30 = vpop.f32.mrf.mxu0 }
  0xce   :  { %v116_v31 = vadd.f32 %v331_v29, %v115_v30 }
  0xcf   :  { %v384_v32 = vpop.f32.mrf.mxu0 }
  0xd0   :  { %v119_v33 = vmax.f32 %v116_v31, 0.0 }
  0xd2   :  { %418 = vmatmul.mubr.f32.vlgmr.msra.gmra.mxu1 %v119_v33 }
 0x192   :  { %v209_v38 = vpop.f32.mrf.mxu1 }
 0x193   :  { %v210_v39 = vadd.f32 %v334_v37, %v209_v38 }
 0x194   :  { %v419_v40 = vpop.f32.mrf.mxu1 }
 0x195   :  { %v213_v41 = vmax.f32 %v210_v39, 0.0 }
 0x197   :  { %437 = vmatmul.mubr.msk.f32.vlgmr.msra.gmra.mxu0 %vm229_vm3, %v213_v41 }
 0x257   :  { %v299_v43 = vpop.f32.mrf.mxu0 }
 0x258   :  { %v300_v44 = vadd.f32 %v335_v42, %v299_v43 }
 0x259   :  { %v438_v45 = vpop.f32.mrf.mxu0 }
 0x25a   :  { %v304_v46 = vsel %vm303_vm4, %v300_v44, -inf }
 0x25b   :  { %305 = vmax.xlane.f32.xlu0 %v304_v46 }
 0x2e4   :  { %v306_v47 = vpop.xlane.xlu0 %305 }
 0x2e5   :  { %v307_v48 = vsub.f32 %v300_v44, %v306_v47 }
 0x2e7   :  { %v308_v49 = vmul.f32 1.442695, %v307_v48 }
 0x2e9   :  { %442 = vpow2.f32 %v308_v49 }
 0x2f6   :  { %v443_v50 = vpop.eup %442 }
 0x2f7   :  { %v310_v51 = vsel %vm303_vm4, %v443_v50, 0.0 }
 0x2f8   :  { %311 = vadd.xlane.f32.xlu0 %v310_v51 }
 0x381   :  { %v312_v52 = vpop.xlane.xlu0 %311 }
 0x382   :  { %444 = vrcp.f32 %v312_v52 }
 0x38f   :  { %v445_v53 = vpop.eup %444 }
 0x390   :  { %v315_v54 = vmul.f32 %v445_v53, %v443_v50 }
 0x392   :  { %316 = vst.msk [vmem:[#allocation2] sm:$0xff] %vm303_vm4, %v315_v54 }
 0x393   :  { %457 = shalt.err (!%p454_p4)
}
 0x394   :  { %326 = dma.vmem_to_hbm [thread:$0]  %s324_s5, 128, %s662_s7, [#allocation3]  }
 0x395   :  { %466 = dma.done.wait [#allocation3], 128  }
 0x396   :  { %467 = vsyncadd [#allocation3], 4294967168 }
 0x397   :  { %330 = vsyncpa [#allocation3], 1 }

</bundles_post_ra>
